<compile_context>
chip_gen: v5e
topology: v5e:2x2
jax: 0.10.0
libtpu: 0.0.40
codegen_flags: <defaults>
</compile_context>

<pallas_src>
import functools

import jax
import jax.numpy as jnp
from jax import lax
from jax.experimental import pallas as pl
from jax.experimental.pallas import tpu as pltpu


def _round_up(a, m):
    return ((a + m - 1) // m) * m


# ---------------------------------------------------------------------------
# Prologue kernel: support_scaled = (X @ W) * d[:, None]   (column scale folded)
# ---------------------------------------------------------------------------
def _support_kernel(x_ref, w_ref, d_ref, out_ref):
    s = jnp.dot(x_ref[...], w_ref[...], preferred_element_type=jnp.float32)
    out_ref[...] = (s * d_ref[...]).astype(out_ref.dtype)


# ---------------------------------------------------------------------------
# Main kernel: out[i,:] = d[i] * sum_k  adj[i, k_tile] @ support_scaled[k_tile]
# ---------------------------------------------------------------------------
def _gcn_aggregate_kernel(*refs, all_self_loop, use_bias, tm, tk, compute_dtype):
    if use_bias:
        d_ref, adj_ref, s_ref, b_ref, out_ref, acc_ref = refs
    else:
        d_ref, adj_ref, s_ref, out_ref, acc_ref = refs
        b_ref = None

    i = pl.program_id(0)          # output row tile
    k = pl.program_id(1)          # reduction (neighbor) tile

    @pl.when(k == 0)
    def _init():
        acc_ref[...] = jnp.zeros_like(acc_ref)

    adj = adj_ref[...]
    if all_self_loop:
        # adj = eye + adj*(1-eye)  ==  set the diagonal to 1 (single select per tile)
        row = lax.broadcasted_iota(jnp.int32, adj.shape, 0) + i * tm
        col = lax.broadcasted_iota(jnp.int32, adj.shape, 1) + k * tk
        adj = jnp.where(row == col, jnp.float32(1.0), adj)

    acc_ref[...] += jnp.dot(adj.astype(compute_dtype),
                            s_ref[...].astype(compute_dtype),
                            preferred_element_type=jnp.float32)

    @pl.when(k == pl.num_programs(1) - 1)
    def _finalize():
        out = acc_ref[...] * d_ref[...]            # row scale d[i]  (TM,1) broadcast
        if use_bias:
            out = out + b_ref[...]                 # (1, Fout_pad) broadcast
        out_ref[...] = out.astype(out_ref.dtype)


# ---------------------------------------------------------------------------
# Wrapper
# ---------------------------------------------------------------------------
def graph_convolution(x, adj, weight, bias=None, *, all_self_loop=False,
                      compute_dtype=jnp.float32, tm_max=256, tk_max=512):
    """GCN forward. x:[N,Fin], adj:[N,N], weight:[Fin,Fout], bias:[Fout] or None."""
    n, fin = x.shape
    fout = weight.shape[1]

    x = x.astype(jnp.float32)
    adj = adj.astype(jnp.float32)
    weight = weight.astype(jnp.float32)

    # ---- normalization vector d = deg^{-1/2} (one XLA streaming reduce over adj)
    deg = jnp.sum(adj, axis=1)
    if all_self_loop:
        deg = deg - jnp.diagonal(adj) + 1.0        # diagonal replaced by 1
    d = lax.rsqrt(deg)                             # matches torch .pow(-0.5)

    # ---- tile / padding geometry ------------------------------------------
    fout_p = _round_up(fout, 128)                  # lane-dense output & MXU columns
    tm = min(tm_max, _round_up(n, 8))              # output-row tile (sublane mult.)
    tk = min(tk_max, _round_up(n, 128))            # reduction tile (lane mult.)
    n_rows = _round_up(n, tm)
    n_cols = _round_up(n, tk)

    adj_p = jnp.pad(adj, ((0, n_rows - n), (0, n_cols - n)))
    x_p = jnp.pad(x, ((0, n_cols - n), (0, 0)))
    w_p = jnp.pad(weight, ((0, 0), (0, fout_p - fout)))
    # padded nodes get d=0 -> their rows of support_scaled are 0 -> no contribution
    d_col = jnp.pad(d, (0, n_cols - n)).reshape(n_cols, 1)
    d_row = jnp.pad(d, (0, n_rows - n)).reshape(n_rows, 1)

    cparams = pltpu.CompilerParams(
        dimension_semantics=("parallel",),
        vmem_limit_bytes=32 * 1024 * 1024)

    # ---- prologue: support_scaled = (X @ W) * d  (computed exactly once) ----
    support = pl.pallas_call(
        _support_kernel,
        out_shape=jax.ShapeDtypeStruct((n_cols, fout_p), jnp.float32),
        grid_spec=pltpu.PrefetchScalarGridSpec(
            num_scalar_prefetch=0,
            grid=(n_cols // tk,),
            in_specs=[
                pl.BlockSpec((tk, fin), lambda i: (i, 0)),
                pl.BlockSpec((fin, fout_p), lambda i: (0, 0)),   # W stays resident
                pl.BlockSpec((tk, 1), lambda i: (i, 0)),
            ],
            out_specs=pl.BlockSpec((tk, fout_p), lambda i: (i, 0)),
        ),
        compiler_params=cparams,
    )(x_p, w_p, d_col)

    # ---- main tiled aggregation: adj @ support_scaled with fused scaling ----
    use_bias = bias is not None
    kernel = functools.partial(
        _gcn_aggregate_kernel,
        all_self_loop=all_self_loop, use_bias=use_bias,
        tm=tm, tk=tk, compute_dtype=compute_dtype)

    in_specs = [
        pl.BlockSpec((tm, 1), lambda i, k: (i, 0)),        # d (row scale)
        pl.BlockSpec((tm, tk), lambda i, k: (i, k)),       # adj tile (single HBM pass)
        pl.BlockSpec((tk, fout_p), lambda i, k: (k, 0)),   # support_scaled tile
    ]
    args = [d_row, adj_p, support]
    if use_bias:
        b_p = jnp.pad(bias.astype(jnp.float32).reshape(1, fout),
                      ((0, 0), (0, fout_p - fout)))
        in_specs.append(pl.BlockSpec((1, fout_p), lambda i, k: (0, 0)))
        args.append(b_p)

    out_p = pl.pallas_call(
        kernel,
        out_shape=jax.ShapeDtypeStruct((n_rows, fout_p), jnp.float32),
        grid_spec=pltpu.PrefetchScalarGridSpec(
            num_scalar_prefetch=0,
            grid=(n_rows // tm, n_cols // tk),             # reduction axis last
            in_specs=in_specs,
            out_specs=pl.BlockSpec((tm, fout_p), lambda i, k: (i, 0)),
            scratch_shapes=[pltpu.VMEM((tm, fout_p), jnp.float32)],
        ),
        compiler_params=pltpu.CompilerParams(
            dimension_semantics=("parallel", "arbitrary"),
            vmem_limit_bytes=32 * 1024 * 1024),
    )(*args)

    return out_p[:n, :fout]


# ---------------------------------------------------------------------------
# Pure-JAX reference (mirrors the PyTorch module)
# ---------------------------------------------------------------------------
def _reference(x, adj, weight, bias, all_self_loop):
    adj = adj.astype(jnp.float32)
    n = adj.shape[0]
    if all_self_loop:
        eye = jnp.eye(n, dtype=jnp.float32)
        adj = eye + adj * (1.0 - eye)
    deg = adj.sum(axis=1)
    d = deg ** -0.5
    norm_adj = (d[:, None] * adj) * d[None, :]
    out = norm_adj @ (x.astype(jnp.float32) @ weight)
    if bias is not None:
        out = out + bias
    return out


if __name__ == "__main__":
    N, F_IN, F_OUT = 8, 16, 32

    key = jax.random.PRNGKey(0)
    k_x, k_adj, k_w, k_b = jax.random.split(key, 4)

    # deterministic "reset_parameters": uniform(-stdv, stdv), stdv = 1/sqrt(out)
    stdv = 1.0 / (F_OUT ** 0.5)
    weight = jax.random.uniform(k_w, (F_IN, F_OUT), jnp.float32, -stdv, stdv)
    bias = jax.random.uniform(k_b, (F_OUT,), jnp.float32, -stdv, stdv)

    x = jax.random.normal(k_x, (N, F_IN), jnp.float32)
    adj = jax.random.uniform(k_adj, (N, N), jnp.float32, 0.1, 1.0)  # positive degrees

    # default (f32) path, with bias
    out = jax.block_until_ready(graph_convolution(x, adj, weight, bias))
    ref = _reference(x, adj, weight, bias, False)
    assert out.shape == (N, F_OUT)
    assert jnp.allclose(out, ref, atol=1e-4, rtol=1e-4), "mismatch vs reference"

    # all_self_loop branch
    out2 = jax.block_until_ready(
        graph_convolution(x, adj, weight, bias, all_self_loop=True))
    ref2 = _reference(x, adj, weight, bias, True)
    assert jnp.allclose(out2, ref2, atol=1e-4, rtol=1e-4), "mismatch (self_loop)"

    # no-bias branch (bias input dropped entirely, no dummy DMA)
    out3 = jax.block_until_ready(graph_convolution(x, adj, weight, None))
    ref3 = _reference(x, adj, weight, None, False)
    assert jnp.allclose(out3, ref3, atol=1e-4, rtol=1e-4), "mismatch (no bias)"

    # bf16 MXU-input path (v6e/v7x lever), f32 accumulation — looser tolerance
    out4 = jax.block_until_ready(
        graph_convolution(x, adj, weight, bias, compute_dtype=jnp.bfloat16))
    assert jnp.allclose(out4, ref, atol=5e-2, rtol=5e-2), "mismatch (bf16 MXU)"

    print("KERNEL_OK")
</pallas_src>

<mosaic_0001>
module attributes {stable_mosaic.version = 11 : i64} {
  func.func @_support_kernel(%arg0: i32, %arg1: memref<128x16xf32, #tpu.memory_space<vmem>>, %arg2: memref<16x128xf32, #tpu.memory_space<vmem>>, %arg3: memref<128x1xf32, #tpu.memory_space<vmem>>, %arg4: memref<128x128xf32, #tpu.memory_space<vmem>>) attributes {dimension_semantics = [#tpu.dimension_semantics<parallel>], iteration_bounds = array<i64: 1>, scalar_prefetch = 0 : i64, scratch_operands = 0 : i64, tpu.core_type = #tpu.core_type<tc>, window_params = [{transform_indices = @transform_0, window_bounds = array<i64: 128, 16>}, {pipeline_mode = #tpu.pipeline_mode<synchronous>, transform_indices = @transform_1, window_bounds = array<i64: 16, 128>}, {transform_indices = @transform_2, window_bounds = array<i64: 128, 1>}, {transform_indices = @transform_3, window_bounds = array<i64: 128, 128>}]} {
    %c0 = arith.constant 0 : index
    %c0_0 = arith.constant 0 : index
    %0 = vector.load %arg1[%c0, %c0_0] : memref<128x16xf32, #tpu.memory_space<vmem>>, vector<128x16xf32>
    %c0_1 = arith.constant 0 : index
    %c0_2 = arith.constant 0 : index
    %1 = vector.load %arg2[%c0_1, %c0_2] : memref<16x128xf32, #tpu.memory_space<vmem>>, vector<16x128xf32>
    %cst = arith.constant dense<0.000000e+00> : vector<128x128xf32>
    %2 = tpu.matmul %0, %1, %cst {dimension_numbers = #tpu.dot_dimension_numbers<[1], [0], [0], [1], [0, 0, 1, 1], [], []>} : vector<128x16xf32>, vector<16x128xf32>, vector<128x128xf32> -> vector<128x128xf32>
    %c0_3 = arith.constant 0 : index
    %c0_4 = arith.constant 0 : index
    %3 = vector.load %arg3[%c0_3, %c0_4] : memref<128x1xf32, #tpu.memory_space<vmem>>, vector<128x1xf32>
    %4 = vector.broadcast %3 : vector<128x1xf32> to vector<128x128xf32>
    %5 = arith.mulf %2, %4 : vector<128x128xf32>
    %c0_5 = arith.constant 0 : index
    %c0_6 = arith.constant 0 : index
    %6 = vector.load %arg4[%c0_5, %c0_6] : memref<128x128xf32, #tpu.memory_space<vmem>>, vector<128x128xf32>
    tpu.vector_store %arg4[%c0_5, %c0_6], %5 {strides = array<i32>} : memref<128x128xf32, #tpu.memory_space<vmem>>, vector<128x128xf32>,
    return
  }
  func.func @transform_0(%arg0: i32) -> (i32, i32) {
    %c0_i32 = arith.constant 0 : i32
    %c0_i32_0 = arith.constant 0 : i32
    return %arg0, %c0_i32 : i32, i32
  }
  func.func @transform_1(%arg0: i32) -> (i32, i32) {
    %c0_i32 = arith.constant 0 : i32
    %c0_i32_0 = arith.constant 0 : i32
    %c0_i32_1 = arith.constant 0 : i32
    return %c0_i32, %c0_i32_0 : i32, i32
  }
  func.func @transform_2(%arg0: i32) -> (i32, i32) {
    %c0_i32 = arith.constant 0 : i32
    %c0_i32_0 = arith.constant 0 : i32
    return %arg0, %c0_i32 : i32, i32
  }
  func.func @transform_3(%arg0: i32) -> (i32, i32) {
    %c0_i32 = arith.constant 0 : i32
    %c0_i32_0 = arith.constant 0 : i32
    return %arg0, %c0_i32 : i32, i32
  }
}

</mosaic_0001>

<bundles_post_ra>
// kernel: tpu_custom_call.1
= control target key start
LH: loop header
LB: loop body
LE: loop exit
PB: predicated region body
PF: predicated region fallthrough
CT: control target
= control target key end

     0   :  { %v348_v1 = vmov 0   ;;  %vm33_vm0 = vcmask 130048   ;;  %s493_s0 = inlined_call_operand.vmem [shape: f32[128,16], index: 0, kind: input, shape index: {}]   ;;  %s494_s1 = inlined_call_operand.vmem [shape: f32[16,128], index: 1, kind: input, shape index: {}]   ;;  %s495_s2 = inlined_call_operand.vmem [shape: f32[128,1], index: 2, kind: input, shape index: {}]   ;;  %s496_s3 = inlined_call_operand.hbm [shape: f32[128,128], index: 3, kind: output, shape index: {}]  }
   0x1   :  { %v32_v0 = vld [vmem:[%s494_s1 + $0x8] sm:$0xff]  ;;  %320 = vset.pattern.permute.xlu1 %v348_v1  ;;  %319 = vset.pattern.permute.xlu0 %v348_v1  ;;  %v149_v2 = vld [vmem:[%s495_s2 + $0x10] sm:$0xff]  ;;  %v147_v3 = vld [vmem:[%s495_s2] sm:$0xff] }
   0x2   :  { %96 = vmatpush.msra.mxu0 %v32_v0  ;;  %309 = vmatpush.msra.mxu1 %v32_v0  ;;  %v31_v4 = vld [vmem:[%s494_s1] sm:$0xff]  ;;  %v150_v10 = vld [vmem:[%s495_s2 + $0x18] sm:$0xff]  ;;  %v148_v11 = vld [vmem:[%s495_s2 + $0x8] sm:$0xff] }
   0x3   :  { %310 = vmatpush.msra.mxu2 %v32_v0  ;;  %311 = vmatpush.msra.mxu3 %v32_v0  ;;  %v15_v5 = vld [vmem:[%s493_s0] sm:$0xff] }
   0x4   :  { %175 = vperm.xlu1 %320, %v149_v2   ;;  %165 = vperm.xlu0 %319, %v147_v3   ;;  %v19_v6 = vld [vmem:[%s493_s0 + $0x20] sm:$0xff] }
   0x5   :  { %97 = vmatpush.msra.mxu0 %v31_v4  ;;  %312 = vmatpush.msra.mxu1 %v31_v4  ;;  %v23_v7 = vld [vmem:[%s493_s0 + $0x40] sm:$0xff] }
   0x6   :  { %313 = vmatpush.msra.mxu2 %v31_v4  ;;  %314 = vmatpush.msra.mxu3 %v31_v4  ;;  %v27_v8 = vld [vmem:[%s493_s0 + $0x60] sm:$0xff] }
   0x7   :  { %v151_v9 = vld [vmem:[%s495_s2 + $0x20] sm:$0xff]  ;;  %321 = vset.pattern.permute.xlu2 %v348_v1  ;;  %293 = vmatmul.msk.f32.vlgmr.msra.gmra.mxu0 %vm33_vm0, %v15_v5 }
   0x8   :  { %297 = vmatmul.msk.f32.vlgmr.msra.gmra.mxu1 %vm33_vm0, %v19_v6  ;;  %301 = vmatmul.msk.f32.vlgmr.msra.gmra.mxu2 %vm33_vm0, %v23_v7 }
   0x9   :  { %305 = vmatmul.msk.f32.vlgmr.msra.gmra.mxu3 %vm33_vm0, %v27_v8  ;;  %185 = vperm.xlu2 %321, %v151_v9  }
   0xa   :  { %8 = vsyncpa [#allocation3], 0  ;;  %v16_v12 = vld [vmem:[%s493_s0 + $0x8] sm:$0xff]  ;;  %v154_v17 = vld [vmem:[%s495_s2 + $0x38] sm:$0xff]  ;;  %s281_s1 = sshll.u32 %s496_s3, 4  ;;  %s350_s26 = smov 128   ;;  %s282_s1 = int_to_ptr.hbm [resolvable:$true] %s281_s1 }
   0xb   :  { %v20_v13 = vld [vmem:[%s493_s0 + $0x28] sm:$0xff]  ;;  %v153_v18 = vld [vmem:[%s495_s2 + $0x30] sm:$0xff]  ;;  %v155_v23 = vld [vmem:[%s495_s2 + $0x40] sm:$0xff]  ;;  %s351_s27 = smov 8  }
   0xc   :  { %180 = vperm.xlu1 %320, %v150_v10   ;;  %170 = vperm.xlu0 %319, %v148_v11   ;;  %v24_v14 = vld [vmem:[%s493_s0 + $0x48] sm:$0xff]  ;;  %v17_v19 = vld [vmem:[%s493_s0 + $0x10] sm:$0xff]  ;;  %v18_v26 = vld [vmem:[%s493_s0 + $0x18] sm:$0xff] }
   0xd   :  { %v28_v15 = vld [vmem:[%s493_s0 + $0x68] sm:$0xff]  ;;  %v21_v20 = vld [vmem:[%s493_s0 + $0x30] sm:$0xff]  ;;  %v22_v27 = vld [vmem:[%s493_s0 + $0x38] sm:$0xff] }
   0xe   :  { %v152_v16 = vld [vmem:[%s495_s2 + $0x28] sm:$0xff]  ;;  %v25_v21 = vld [vmem:[%s493_s0 + $0x50] sm:$0xff]  ;;  %v26_v28 = vld [vmem:[%s493_s0 + $0x58] sm:$0xff] }
   0xf   :  { %294 = vmatmul.msk.f32.gmra.mxu0 %vm33_vm0, %v16_v12  ;;  %v29_v22 = vld [vmem:[%s493_s0 + $0x70] sm:$0xff]  ;;  %v156_v25 = vld [vmem:[%s495_s2 + $0x48] sm:$0xff]  ;;  %v30_v29 = vld [vmem:[%s493_s0 + $0x78] sm:$0xff] }
  0x10   :  { %298 = vmatmul.msk.f32.gmra.mxu1 %vm33_vm0, %v20_v13  ;;  %302 = vmatmul.msk.f32.gmra.mxu2 %vm33_vm0, %v24_v14  ;;  %v157_v24 = vld [vmem:[%s495_s2 + $0x50] sm:$0xff]  ;;  %v158_v30 = vld [vmem:[%s495_s2 + $0x58] sm:$0xff]  ;;  %v160_v31 = vld [vmem:[%s495_s2 + $0x68] sm:$0xff] }
  0x11   :  { %306 = vmatmul.msk.f32.gmra.mxu3 %vm33_vm0, %v28_v15  ;;  %190 = vperm.xlu2 %321, %v152_v16   ;;  %v159_v32 = vld [vmem:[%s495_s2 + $0x60] sm:$0xff]  ;;  %v161_v33 = vld [vmem:[%s495_s2 + $0x70] sm:$0xff]  ;;  %v162_v34 = vld [vmem:[%s495_s2 + $0x78] sm:$0xff]  ;;  %s349_s2 = smov [#allocation2]  }
  0x12   :  { %s279_s23 = sshll.u32 %s349_s2, 4  ;;  %s280_s23 = int_to_ptr.vmem [resolvable:$true] %s279_s23 }
  0x14   :  { %200 = vperm.xlu1 %320, %v154_v17   ;;  %195 = vperm.xlu0 %319, %v153_v18  }
  0x17   :  { %295 = vmatmul.msk.f32.gmra.mxu0 %vm33_vm0, %v17_v19 }
  0x18   :  { %299 = vmatmul.msk.f32.gmra.mxu1 %vm33_vm0, %v21_v20  ;;  %303 = vmatmul.msk.f32.gmra.mxu2 %vm33_vm0, %v25_v21 }
  0x19   :  { %307 = vmatmul.msk.f32.gmra.mxu3 %vm33_vm0, %v29_v22  ;;  %205 = vperm.xlu2 %321, %v155_v23  }
  0x1c   :  { %215 = vperm.xlu1 %320, %v157_v24   ;;  %210 = vperm.xlu0 %319, %v156_v25  }
  0x1f   :  { %296 = vmatmul.msk.f32.gmra.mxu0 %vm33_vm0, %v18_v26 }
  0x20   :  { %300 = vmatmul.msk.f32.gmra.mxu1 %vm33_vm0, %v22_v27  ;;  %304 = vmatmul.msk.f32.gmra.mxu2 %vm33_vm0, %v26_v28 }
  0x21   :  { %308 = vmatmul.msk.f32.gmra.mxu3 %vm33_vm0, %v30_v29  ;;  %220 = vperm.xlu2 %321, %v158_v30  }
  0x24   :  { %230 = vperm.xlu1 %320, %v160_v31   ;;  %225 = vperm.xlu0 %319, %v159_v32  }
  0x29   :  { %235 = vperm.xlu2 %321, %v161_v33  }
  0x2c   :  { %240 = vperm.xlu0 %319, %v162_v34  }
  0x63   :  { %v186_v35 = vpop.permute.xlu2 %185 }
  0x6b   :  { %v191_v38 = vpop.permute.xlu2 %190 }
  0x73   :  { %v206_v47 = vpop.permute.xlu2 %205 }
  0x76   :  { %v176_v36 = vpop.permute.xlu1 %175  ;;  %v166_v37 = vpop.permute.xlu0 %165 }
  0x7b   :  { %v221_v57 = vpop.permute.xlu2 %220 }
  0x7e   :  { %v181_v39 = vpop.permute.xlu1 %180  ;;  %v171_v40 = vpop.permute.xlu0 %170 }
  0x83   :  { %v236_v5 = vpop.permute.xlu2 %235 }
  0x84   :  { %v99_v41 = vpop.f32.mrf.mxu0 }
  0x85   :  { %v243_v42 = vmul.f32 %v166_v37, %v99_v41  ;;  %v111_v43 = vpop.f32.mrf.mxu1 }
  0x86   :  { %v247_v44 = vmul.f32 %v186_v35, %v111_v43  ;;  %v201_v45 = vpop.permute.xlu1 %200  ;;  %v196_v46 = vpop.permute.xlu0 %195 }
  0x87   :  { %259 = vst [vmem:[#allocation2] sm:$0xff] %v243_v42 }
  0x88   :  { %263 = vst [vmem:[#allocation2 + $0x20] sm:$0xff] %v247_v44 }
  0x8b   :  { %v123_v48 = vpop.f32.mrf.mxu2 }
  0x8c   :  { %v251_v49 = vmul.f32 %v206_v47, %v123_v48  ;;  %v135_v50 = vpop.f32.mrf.mxu3  ;;  %v102_v51 = vpop.f32.mrf.mxu0 }
  0x8d   :  { %v244_v52 = vmul.f32 %v171_v40, %v102_v51  ;;  %v114_v53 = vpop.f32.mrf.mxu1 }
  0x8e   :  { %267 = vst [vmem:[#allocation2 + $0x40] sm:$0xff] %v251_v49  ;;  %v248_v54 = vmul.f32 %v191_v38, %v114_v53  ;;  %v216_v55 = vpop.permute.xlu1 %215  ;;  %v211_v56 = vpop.permute.xlu0 %210 }
  0x8f   :  { %260 = vst [vmem:[#allocation2 + $0x8] sm:$0xff] %v244_v52 }
  0x90   :  { %264 = vst [vmem:[#allocation2 + $0x28] sm:$0xff] %v248_v54 }
  0x93   :  { %v126_v58 = vpop.f32.mrf.mxu2 }
  0x94   :  { %v252_v59 = vmul.f32 %v211_v56, %v126_v58  ;;  %v138_v60 = vpop.f32.mrf.mxu3  ;;  %v105_v61 = vpop.f32.mrf.mxu0 }
  0x95   :  { %v245_v62 = vmul.f32 %v176_v36, %v105_v61  ;;  %v117_v63 = vpop.f32.mrf.mxu1 }
  0x96   :  { %268 = vst [vmem:[#allocation2 + $0x48] sm:$0xff] %v252_v59  ;;  %v249_v0 = vmul.f32 %v196_v46, %v117_v63  ;;  %v231_v1 = vpop.permute.xlu1 %230  ;;  %v226_v2 = vpop.permute.xlu0 %225 }
  0x97   :  { %261 = vst [vmem:[#allocation2 + $0x10] sm:$0xff] %v245_v62  ;;  %v256_v3 = vmul.f32 %v231_v1, %v138_v60  ;;  %v255_v4 = vmul.f32 %v226_v2, %v135_v50 }
  0x98   :  { %265 = vst [vmem:[#allocation2 + $0x30] sm:$0xff] %v249_v0 }
  0x99   :  { %272 = vst [vmem:[#allocation2 + $0x68] sm:$0xff] %v256_v3 }
  0x9a   :  { %271 = vst [vmem:[#allocation2 + $0x60] sm:$0xff] %v255_v4 }
  0x9b   :  { %v129_v6 = vpop.f32.mrf.mxu2 }
  0x9c   :  { %v253_v7 = vmul.f32 %v216_v55, %v129_v6  ;;  %v141_v8 = vpop.f32.mrf.mxu3  ;;  %v108_v9 = vpop.f32.mrf.mxu0 }
  0x9d   :  { %v257_v10 = vmul.f32 %v236_v5, %v141_v8  ;;  %v246_v11 = vmul.f32 %v181_v39, %v108_v9  ;;  %v120_v12 = vpop.f32.mrf.mxu1 }
  0x9e   :  { %269 = vst [vmem:[#allocation2 + $0x50] sm:$0xff] %v253_v7  ;;  %v250_v13 = vmul.f32 %v201_v45, %v120_v12  ;;  %v241_v15 = vpop.permute.xlu0 %240 }
  0x9f   :  { %273 = vst [vmem:[#allocation2 + $0x70] sm:$0xff] %v257_v10 }
  0xa0   :  { %262 = vst [vmem:[#allocation2 + $0x18] sm:$0xff] %v246_v11 }
  0xa1   :  { %266 = vst [vmem:[#allocation2 + $0x38] sm:$0xff] %v250_v13 }
  0xa3   :  { %v132_v14 = vpop.f32.mrf.mxu2 }
  0xa4   :  { %v254_v16 = vmul.f32 %v221_v57, %v132_v14  ;;  %v144_v17 = vpop.f32.mrf.mxu3 }
  0xa5   :  { %v258_v18 = vmul.f32 %v241_v15, %v144_v17 }
  0xa6   :  { %270 = vst [vmem:[#allocation2 + $0x58] sm:$0xff] %v254_v16 }
  0xa7   :  { %274 = vst [vmem:[#allocation2 + $0x78] sm:$0xff] %v258_v18 }
  0xa8   :  { %287 = dma.vmem_to_hbm [thread:$0]  %s280_s23, 2048, %s282_s1, [#allocation3], %s350_s26, %s350_s26, %s351_s27  }
  0xa9   :  { %346 = dma.done.wait [#allocation3], 2048  }
  0xaa   :  { %347 = vsyncadd [#allocation3], 4294965248 }
  0xab   :  { %292 = vsyncpa [#allocation3], 1 }

</bundles_post_ra>
